<compile_context>
chip_gen: v7x
topology: tpu7x:2x2x1
jax: 0.10.0
libtpu: 0.0.40
codegen_flags: <defaults>
</compile_context>

<pallas_src>
import math
from typing import NamedTuple

import jax
import jax.numpy as jnp
from jax.experimental import pallas as pl
from jax.experimental.pallas import tpu as pltpu


def _round_up(n: int, m: int) -> int:
    return (n + m - 1) // m * m


def _vmem_budget_bytes() -> int:
    """Physical VMEM per core with headroom for compiler-internal scratch."""
    try:
        info = pltpu.get_tpu_info()
        phys = int(getattr(info, "vmem_capacity_bytes", 64 << 20))
    except Exception:  # pragma: no cover - conservative fallback
        phys = 64 << 20
    # 75% of physical: v7x 64 MiB -> 48 MiB, v5e/v6e 128 MiB -> 96 MiB.
    return int(min(max((phys * 3) // 4, 32 << 20), 100 << 20))


def _lane_quantum(hidden: int, d_out: int) -> int:
    """Smallest TE such that TE*H and TE*D_out are both multiples of 128 lanes."""
    return math.lcm(128 // math.gcd(hidden, 128), 128 // math.gcd(d_out, 128))


def _auto_members_per_step(E, d_in, hidden, d_out, itemsize, vmem_budget) -> int:
    """Grow TE in lane-quantum steps: keep per-step weight chunk ~2-8 MiB and
    (when E allows) at least 4 grid steps for pipelining / megacore sharding."""
    q = _lane_quantum(hidden, d_out)
    target = max(2 << 20, min(8 << 20, vmem_budget // 8))

    def chunk_bytes(te):
        w1 = d_in * te * hidden
        w2 = (te * hidden) * (te * d_out)          # block-diagonal layer-2 chunk
        return itemsize * (w1 + w2) + 4 * te * (hidden + d_out)

    te = q
    max_groups = -(-E // q)                        # groups achievable at the quantum
    while True:
        nxt = te + q
        if nxt > E:
            break
        if chunk_bytes(nxt) > target:
            break
        if -(-E // nxt) < min(4, max_groups):      # keep >= 4 steps when achievable
            break
        te = nxt
    return te


# --------------------------------------------------------------------------- #
# Kernel: one grid step = TE ensemble members, two lane-dense MXU matmuls.
# --------------------------------------------------------------------------- #
def _ensemble_mlp_kernel(x_ref, w1_ref, b1_ref, w2_ref, b2_ref, o_ref):
    x = x_ref[...]                       # (B_pad, D_in)        shared input (constant block)
    w1 = w1_ref[0]                       # (D_in, TE*H)         pre-transposed, members fused on lanes
    b1 = b1_ref[0]                       # (1, TE*H)            f32
    w2 = w2_ref[0]                       # (TE*H, TE*D_out)     block-diagonal, lane-dense
    b2 = b2_ref[0]                       # (1, TE*D_out)        f32

    # Layer 1: one wide MXU matmul for all TE members (x is shared). f32 accumulate.
    h = jnp.dot(x, w1, preferred_element_type=jnp.float32) + b1
    h = jnp.maximum(h, 0.0)              # ReLU, (B_pad, TE*H) f32

    # Layer 2: single lane-dense block-diagonal matmul -> result IS the output slab.
    y = jnp.dot(h.astype(w2.dtype), w2, preferred_element_type=jnp.float32) + b2
    o_ref[0] = y.astype(o_ref.dtype)     # one wide (multiple-of-128-lane) store


# --------------------------------------------------------------------------- #
# One-time weight packing (call once; keep the packed params around).
# --------------------------------------------------------------------------- #
class PackedEnsembleParams(NamedTuple):
    w1: jax.Array            # (G, D_in, TE*H)         compute dtype
    b1: jax.Array            # (G, 1, TE*H)            f32
    w2: jax.Array            # (G, TE*H, TE*D_out)     compute dtype, block-diagonal
    b2: jax.Array            # (G, 1, TE*D_out)        f32
    num_members: int
    members_per_step: int
    hidden: int
    d_in: int
    d_out: int


def prepare_ensemble_params(w1, b1, w2, b2, *, members_per_step=None,
                            compute_dtype=jnp.bfloat16) -> PackedEnsembleParams:
    """Pack stacked PyTorch-layout params into the fused, pre-transposed,
    lane-dense layout the kernel streams.  Do this ONCE, outside the hot path.

    w1: (E, H, D_in),  b1: (E, H)
    w2: (E, D_out, H), b2: (E, D_out)
    """
    E, H, D_in = w1.shape
    D_out = w2.shape[1]
    itemsize = jnp.dtype(compute_dtype).itemsize
    budget = _vmem_budget_bytes()
    q = _lane_quantum(H, D_out)

    if members_per_step is None:
        TE = _auto_members_per_step(E, D_in, H, D_out, itemsize, budget)
    else:
        TE = _round_up(max(1, int(members_per_step)), q)   # keep lane density

    E_pad = _round_up(max(E, TE), TE)
    G = E_pad // TE

    f32 = jnp.float32

    def _pad_members(a):
        a = a.astype(f32)
        if E_pad == E:
            return a
        return jnp.pad(a, [(0, E_pad - E)] + [(0, 0)] * (a.ndim - 1))

    w1_p, b1_p, w2_p, b2_p = map(_pad_members, (w1, b1, w2, b2))

    # w1_g[g, d, t*H + h] = w1[g*TE + t, h, d]   (pre-transposed, members on lanes)
    w1_g = (w1_p.reshape(G, TE, H, D_in)
                 .transpose(0, 3, 1, 2)
                 .reshape(G, D_in, TE * H)
                 .astype(compute_dtype))
    b1_g = b1_p.reshape(G, 1, TE * H)                         # f32

    # Block-diagonal W2: bd[g, t*H + h, s*D_out + o] = W2[g*TE+t, o, h] * (t == s).
    # Built in f32 with an exact 0/1 eye so off-diagonal blocks are exactly zero.
    w2_g = w2_p.transpose(0, 2, 1).reshape(G, TE, H, D_out)   # [g, t, h, o]
    eye = jnp.eye(TE, dtype=f32)
    w2_bd = (jnp.einsum("gthd,ts->gthsd", w2_g, eye)
                .reshape(G, TE * H, TE * D_out)
                .astype(compute_dtype))
    b2_g = b2_p.reshape(G, 1, TE * D_out)                     # f32

    return PackedEnsembleParams(w1_g, b1_g, w2_bd, b2_g, E, TE, H, D_in, D_out)


# --------------------------------------------------------------------------- #
# Forward
# --------------------------------------------------------------------------- #
def ensemble_forward(x, packed: PackedEnsembleParams):
    """x: (B, D_in) shared input -> (E, B, D_out), matching torch.vmap output."""
    E = packed.num_members
    TE = packed.members_per_step
    H = packed.hidden
    D_in = packed.d_in
    D_out = packed.d_out
    G = packed.w1.shape[0]
    B = x.shape[0]
    B_pad = _round_up(max(B, 8), 8)          # fill >= 8 sublanes / MXU rows

    cdt = packed.w1.dtype
    f32 = jnp.float32
    itemsize = jnp.dtype(cdt).itemsize

    x_p = jnp.zeros((B_pad, D_in), cdt).at[:B].set(x.astype(cdt))

    # --- scheduler / VMEM hints (dtype- and layout-consistent) -------------
    flops = 2 * G * B_pad * (D_in * TE * H + (TE * H) * (TE * D_out))
    bytes_accessed = (itemsize * (B_pad * D_in
                                  + G * (D_in * TE * H + (TE * H) * (TE * D_out)))
                      + 4 * G * (TE * H + TE * D_out + B_pad * TE * D_out))
    per_step_bytes = (itemsize * (B_pad * D_in + D_in * TE * H + (TE * H) * (TE * D_out))
                      + 4 * (TE * H + TE * D_out + B_pad * TE * D_out))
    budget = _vmem_budget_bytes()            # ~48 MiB on v7x, ~96 MiB on v5e/v6e
    vmem_limit = int(min(max(2 * per_step_bytes + (4 << 20), 16 << 20), budget))

    out_slab = pl.pallas_call(
        _ensemble_mlp_kernel,
        out_shape=jax.ShapeDtypeStruct((G, B_pad, TE * D_out), f32),
        grid_spec=pltpu.PrefetchScalarGridSpec(
            num_scalar_prefetch=0,
            grid=(G,),
            in_specs=[
                # x: constant block index -> resident across the grid.
                pl.BlockSpec((B_pad, D_in), lambda g: (0, 0)),
                pl.BlockSpec((1, D_in, TE * H), lambda g: (g, 0, 0)),        # W1 chunk
                pl.BlockSpec((1, 1, TE * H), lambda g: (g, 0, 0)),           # b1 chunk
                pl.BlockSpec((1, TE * H, TE * D_out), lambda g: (g, 0, 0)),  # W2 block-diag chunk
                pl.BlockSpec((1, 1, TE * D_out), lambda g: (g, 0, 0)),       # b2 chunk
            ],
            out_specs=pl.BlockSpec((1, B_pad, TE * D_out), lambda g: (g, 0, 0)),
        ),
        compiler_params=pltpu.CompilerParams(
            dimension_semantics=("parallel",),   # shards ensemble chunks across v7x's 2 TCs
            vmem_limit_bytes=vmem_limit,
        ),
        cost_estimate=pl.CostEstimate(
            flops=flops, transcendentals=0, bytes_accessed=bytes_accessed),
    )(x_p, packed.w1, packed.b1, packed.w2, packed.b2)

    # (G, B_pad, TE*D_out) -> (E, B, D_out): cheap XLA layout plumbing in HBM.
    E_pad = G * TE
    out = (out_slab.reshape(G, B_pad, TE, D_out)
                    .transpose(0, 2, 1, 3)
                    .reshape(E_pad, B_pad, D_out))
    return out[:E, :B, :]


def _reference_forward(x, w1, b1, w2, b2):
    # Pure-JAX reference mirroring torch.vmap(functional_call(...), (0, 0, None)).
    def member(w1_e, b1_e, w2_e, b2_e):
        h = jnp.maximum(x @ w1_e.T + b1_e, 0.0)
        return h @ w2_e.T + b2_e
    return jax.vmap(member)(w1, b1, w2, b2)


def _make_params(key, E, D_in, H, D_out):
    k_x, k_w1, k_b1, k_w2, k_b2 = jax.random.split(key, 5)
    w1 = jax.random.normal(k_w1, (E, H, D_in), dtype=jnp.float32) * 0.1
    b1 = jax.random.normal(k_b1, (E, H), dtype=jnp.float32) * 0.1
    w2 = jax.random.normal(k_w2, (E, D_out, H), dtype=jnp.float32) * 0.1
    b2 = jax.random.normal(k_b2, (E, D_out), dtype=jnp.float32) * 0.1
    return k_x, w1, b1, w2, b2


if __name__ == "__main__":
    key = jax.random.PRNGKey(0)
    k1, k2 = jax.random.split(key)

    # --- Scenario 1: tiny ensemble (E=3, B=2), single grid step ------------
    E, B, D_in, H, D_out = 3, 2, 32, 32, 8
    k_x, w1, b1, w2, b2 = _make_params(k1, E, D_in, H, D_out)
    x = jax.random.normal(k_x, (B, D_in), dtype=jnp.float32)
    ref = _reference_forward(x, w1, b1, w2, b2)

    # f32 compute path: matches the reference tightly.
    packed_f32 = prepare_ensemble_params(w1, b1, w2, b2, compute_dtype=jnp.float32)
    out_f32 = jax.block_until_ready(ensemble_forward(x, packed_f32))
    assert out_f32.shape == (E, B, D_out), out_f32.shape
    assert jnp.allclose(out_f32, ref, atol=1e-4, rtol=1e-4), "mismatch (f32 path)"

    # bf16 compute path (default): intentional numerics change -> looser tolerance.
    packed_bf16 = prepare_ensemble_params(w1, b1, w2, b2)   # compute_dtype=bf16
    out_bf16 = jax.block_until_ready(ensemble_forward(x, packed_bf16))
    assert out_bf16.shape == (E, B, D_out), out_bf16.shape
    assert jnp.allclose(out_bf16, ref, atol=5e-2, rtol=5e-2), "mismatch (bf16 path)"

    # --- Scenario 2: larger ensemble (E=48) -> multi-step grid (G > 1) -----
    E2, B2, D_in2, H2, D_out2 = 48, 4, 64, 32, 8
    k_x2, w1_2, b1_2, w2_2, b2_2 = _make_params(k2, E2, D_in2, H2, D_out2)
    x2 = jax.random.normal(k_x2, (B2, D_in2), dtype=jnp.float32)
    ref2 = _reference_forward(x2, w1_2, b1_2, w2_2, b2_2)

    packed2 = prepare_ensemble_params(w1_2, b1_2, w2_2, b2_2)  # auto TE -> G=3 steps
    out2 = jax.block_until_ready(ensemble_forward(x2, packed2))
    assert out2.shape == (E2, B2, D_out2), out2.shape
    assert jnp.allclose(out2, ref2, atol=5e-2, rtol=5e-2), "mismatch (multi-step grid)"

    print("KERNEL_OK")
</pallas_src>

<mosaic_0001>
module attributes {stable_mosaic.version = 11 : i64} {
  func.func @_ensemble_mlp_kernel(%arg0: i32, %arg1: memref<8x32xf32, #tpu.memory_space<vmem>>, %arg2: memref<1x32x512xf32, #tpu.memory_space<vmem>>, %arg3: memref<1x1x512xf32, #tpu.memory_space<vmem>>, %arg4: memref<1x512x128xf32, #tpu.memory_space<vmem>>, %arg5: memref<1x1x128xf32, #tpu.memory_space<vmem>>, %arg6: memref<1x8x128xf32, #tpu.memory_space<vmem>>) attributes {dimension_semantics = [#tpu.dimension_semantics<parallel>], iteration_bounds = array<i64: 1>, scalar_prefetch = 0 : i64, scratch_operands = 0 : i64, tpu.core_type = #tpu.core_type<tc>, window_params = [{pipeline_mode = #tpu.pipeline_mode<synchronous>, transform_indices = @transform_0, window_bounds = array<i64: 8, 32>}, {transform_indices = @transform_1, window_bounds = array<i64: 1, 32, 512>}, {transform_indices = @transform_2, window_bounds = array<i64: 1, 1, 512>}, {transform_indices = @transform_3, window_bounds = array<i64: 1, 512, 128>}, {transform_indices = @transform_4, window_bounds = array<i64: 1, 1, 128>}, {transform_indices = @transform_5, window_bounds = array<i64: 1, 8, 128>}]} {
    %c0 = arith.constant 0 : index
    %c0_0 = arith.constant 0 : index
    %0 = vector.load %arg1[%c0, %c0_0] : memref<8x32xf32, #tpu.memory_space<vmem>>, vector<8x32xf32>
    %c0_1 = arith.constant 0 : index
    %c0_2 = arith.constant 0 : index
    %c0_3 = arith.constant 0 : index
    %1 = vector.load %arg2[%c0_1, %c0_2, %c0_3] : memref<1x32x512xf32, #tpu.memory_space<vmem>>, vector<1x32x512xf32>
    %2 = vector.shape_cast %1 : vector<1x32x512xf32> to vector<32x512xf32>
    %c0_4 = arith.constant 0 : index
    %c0_5 = arith.constant 0 : index
    %c0_6 = arith.constant 0 : index
    %3 = vector.load %arg3[%c0_4, %c0_5, %c0_6] : memref<1x1x512xf32, #tpu.memory_space<vmem>>, vector<1x1x512xf32>
    %4 = vector.shape_cast %3 : vector<1x1x512xf32> to vector<1x512xf32>
    %c0_7 = arith.constant 0 : index
    %c0_8 = arith.constant 0 : index
    %c0_9 = arith.constant 0 : index
    %5 = vector.load %arg4[%c0_7, %c0_8, %c0_9] : memref<1x512x128xf32, #tpu.memory_space<vmem>>, vector<1x512x128xf32>
    %6 = vector.shape_cast %5 : vector<1x512x128xf32> to vector<512x128xf32>
    %c0_10 = arith.constant 0 : index
    %c0_11 = arith.constant 0 : index
    %c0_12 = arith.constant 0 : index
    %7 = vector.load %arg5[%c0_10, %c0_11, %c0_12] : memref<1x1x128xf32, #tpu.memory_space<vmem>>, vector<1x1x128xf32>
    %8 = vector.shape_cast %7 : vector<1x1x128xf32> to vector<1x128xf32>
    %cst = arith.constant dense<0.000000e+00> : vector<8x512xf32>
    %9 = tpu.matmul %0, %2, %cst {dimension_numbers = #tpu.dot_dimension_numbers<[1], [0], [0], [1], [0, 0, 1, 1], [], []>} : vector<8x32xf32>, vector<32x512xf32>, vector<8x512xf32> -> vector<8x512xf32>
    %10 = vector.broadcast %4 : vector<1x512xf32> to vector<8x512xf32>
    %11 = arith.addf %9, %10 : vector<8x512xf32>
    %cst_13 = arith.constant 0.000000e+00 : f32
    %12 = vector.broadcast %cst_13 : f32 to vector<8x512xf32>
    %13 = arith.maximumf %11, %12 : vector<8x512xf32>
    %cst_14 = arith.constant dense<0.000000e+00> : vector<8x128xf32>
    %14 = tpu.matmul %13, %6, %cst_14 {dimension_numbers = #tpu.dot_dimension_numbers<[1], [0], [0], [1], [0, 0, 1, 1], [], []>} : vector<8x512xf32>, vector<512x128xf32>, vector<8x128xf32> -> vector<8x128xf32>
    %15 = vector.broadcast %8 : vector<1x128xf32> to vector<8x128xf32>
    %16 = arith.addf %14, %15 : vector<8x128xf32>
    %c0_15 = arith.constant 0 : index
    %c0_16 = arith.constant 0 : index
    %c0_17 = arith.constant 0 : index
    %17 = vector.load %arg6[%c0_15, %c0_16, %c0_17] : memref<1x8x128xf32, #tpu.memory_space<vmem>>, vector<1x8x128xf32>
    %18 = vector.shape_cast %17 : vector<1x8x128xf32> to vector<8x128xf32>
    %19 = vector.shape_cast %16 : vector<8x128xf32> to vector<1x8x128xf32>
    tpu.vector_store %arg6[%c0_15, %c0_16, %c0_17], %19 {strides = array<i32>} : memref<1x8x128xf32, #tpu.memory_space<vmem>>, vector<1x8x128xf32>,
    return
  }
  func.func @transform_0(%arg0: i32) -> (i32, i32) {
    %c0_i32 = arith.constant 0 : i32
    %c0_i32_0 = arith.constant 0 : i32
    %c0_i32_1 = arith.constant 0 : i32
    return %c0_i32, %c0_i32_0 : i32, i32
  }
  func.func @transform_1(%arg0: i32) -> (i32, i32, i32) {
    %c0_i32 = arith.constant 0 : i32
    %c0_i32_0 = arith.constant 0 : i32
    %c0_i32_1 = arith.constant 0 : i32
    return %arg0, %c0_i32, %c0_i32_0 : i32, i32, i32
  }
  func.func @transform_2(%arg0: i32) -> (i32, i32, i32) {
    %c0_i32 = arith.constant 0 : i32
    %c0_i32_0 = arith.constant 0 : i32
    %c0_i32_1 = arith.constant 0 : i32
    return %arg0, %c0_i32, %c0_i32_0 : i32, i32, i32
  }
  func.func @transform_3(%arg0: i32) -> (i32, i32, i32) {
    %c0_i32 = arith.constant 0 : i32
    %c0_i32_0 = arith.constant 0 : i32
    %c0_i32_1 = arith.constant 0 : i32
    return %arg0, %c0_i32, %c0_i32_0 : i32, i32, i32
  }
  func.func @transform_4(%arg0: i32) -> (i32, i32, i32) {
    %c0_i32 = arith.constant 0 : i32
    %c0_i32_0 = arith.constant 0 : i32
    %c0_i32_1 = arith.constant 0 : i32
    return %arg0, %c0_i32, %c0_i32_0 : i32, i32, i32
  }
  func.func @transform_5(%arg0: i32) -> (i32, i32, i32) {
    %c0_i32 = arith.constant 0 : i32
    %c0_i32_0 = arith.constant 0 : i32
    %c0_i32_1 = arith.constant 0 : i32
    return %arg0, %c0_i32, %c0_i32_0 : i32, i32, i32
  }
}

</mosaic_0001>

<bundles_post_ra>
// kernel: tpu_custom_call.1
= control target key start
LH: loop header
LB: loop body
LE: loop exit
PB: predicated region body
PF: predicated region fallthrough
CT: control target
= control target key end

     0   :  { %10 = vsyncpa [#allocation3], 0  ;;  %s828_s0 = inlined_call_operand.hbm [shape: f32[8,32], index: 0, kind: input, shape index: {}]   ;;  %s829_s1 = inlined_call_operand.hbm [shape: f32[1,32,512], index: 1, kind: input, shape index: {}]   ;;  %s830_s2 = inlined_call_operand.vmem [shape: f32[1,1,512], index: 2, kind: input, shape index: {}]   ;;  %s831_s3 = inlined_call_operand.hbm [shape: f32[1,512,128], index: 3, kind: input, shape index: {}]   ;;  %s832_s4 = inlined_call_operand.vmem [shape: f32[1,1,128], index: 4, kind: input, shape index: {}]   ;;  %s833_s5 = inlined_call_operand.hbm [shape: f32[1,8,128], index: 5, kind: output, shape index: {}]  }
   0x1   :  { %11 = vsyncpa [#allocation6], 0 }
   0x2   :  { %12 = vsyncpa [#allocation4], 0  ;;  %s733_s18 = smov [#allocation5]   ;;  %s639_s22 = scalar_lea.hbm %s829_s1, 2048 }
   0x3   :  { %s28_s19 = sshll.u32 %s733_s18, 4  ;;  %p640_p0 = scmp.ne.s32.totalorder %s829_s1, %s639_s22  ;;  %s29_s19 = int_to_ptr.vmem [resolvable:$true] %s28_s19 }
   0x4   :  { %p643_p1 = scmp.lt.u32.totalorder %s639_s22, %s829_s1 }
   0x6   :  { %p645_p2 = pnand %p643_p1, %p640_p0 }
   0x8   :  { %648 = shalt.err (!%p645_p2)
}
   0x9   :  { %s649_s27 = scalar_lea.vmem %s29_s19, 2048  ;;  %p654_p4 = scmp.lt.s32.totalorder %s29_s19, %s29_s19 }
   0xa   :  { %p650_p3 = scmp.ne.s32.totalorder %s29_s19, %s649_s27  ;;  %p655_p5 = scmp.lt.s32.totalorder %s649_s27, %s649_s27 }
   0xc   :  { %p656_p6 = por %p655_p5, %p654_p4 }
   0xe   :  { %p657_p7 = pnand %p656_p6, %p650_p3 }
  0x10   :  { %660 = shalt.err (!%p657_p7)
}
  0x11   :  { %s734_s28 = smov 512   ;;  %s735_s29 = smov 32  }
  0x12   :  { %34 = dma.hbm_to_vmem [thread:$0]  %s829_s1, 2048, %s29_s19, [#allocation6], %s734_s28, %s734_s28, %s735_s29  }
  0x13   :  { %s736_s7 = smov [#allocation2]   ;;  %s737_s9 = smov [#allocation7]  }
  0x14   :  { %s19_s8 = sshll.u32 %s736_s7, 4  ;;  %s42_s10 = sshll.u32 %s737_s9, 4  ;;  %s20_s8 = int_to_ptr.vmem [resolvable:$true] %s19_s8  ;;  %s43_s10 = int_to_ptr.vmem [resolvable:$true] %s42_s10 }
  0x15   :  { %s661_s13 = scalar_lea.hbm %s828_s0, 128 }
  0x16   :  { %p662_p8 = scmp.ne.s32.totalorder %s828_s0, %s661_s13  ;;  %p665_p9 = scmp.lt.u32.totalorder %s661_s13, %s828_s0 }
  0x18   :  { %p667_p10 = pnand %p665_p9, %p662_p8 }
  0x1a   :  { %670 = shalt.err (!%p667_p10)
}
  0x1b   :  { %s671_s1 = scalar_lea.vmem %s20_s8, 128  ;;  %p676_p12 = scmp.lt.s32.totalorder %s20_s8, %s20_s8 }
  0x1c   :  { %p672_p11 = scmp.ne.s32.totalorder %s20_s8, %s671_s1  ;;  %p677_p13 = scmp.lt.s32.totalorder %s671_s1, %s671_s1 }
  0x1e   :  { %p678_p0 = por %p677_p13, %p676_p12 }
  0x20   :  { %p679_p1 = pnand %p678_p0, %p672_p11 }
  0x22   :  { %682 = shalt.err (!%p679_p1)
}
  0x23   :  { %22 = dma.hbm_to_vmem [thread:$0]  %s828_s0, 128, %s20_s8, [#allocation3]  }
  0x24   :  { %s683_s22 = scalar_lea.hbm %s831_s3, 8192 }
  0x25   :  { %p684_p2 = scmp.ne.s32.totalorder %s831_s3, %s683_s22  ;;  %p687_p3 = scmp.lt.u32.totalorder %s683_s22, %s831_s3 }
  0x27   :  { %p689_p4 = pnand %p687_p3, %p684_p2 }
  0x29   :  { %692 = shalt.err (!%p689_p4)
}
  0x2a   :  { %s693_s27 = scalar_lea.vmem %s43_s10, 8192  ;;  %p698_p6 = scmp.lt.s32.totalorder %s43_s10, %s43_s10 }
  0x2b   :  { %p694_p5 = scmp.ne.s32.totalorder %s43_s10, %s693_s27  ;;  %p699_p7 = scmp.lt.s32.totalorder %s693_s27, %s693_s27 }
  0x2d   :  { %p700_p8 = por %p699_p7, %p698_p6 }
  0x2f   :  { %p701_p9 = pnand %p700_p8, %p694_p5 }
  0x31   :  { %704 = shalt.err (!%p701_p9)
}
  0x32   :  { %s738_s0 = smov 128   ;;  %s739_s28 = smov 8  }
  0x33   :  { %48 = dma.hbm_to_vmem [thread:$0]  %s831_s3, 8192, %s43_s10, [#allocation6], %s738_s0, %s738_s0, %s739_s28  }
  0x34   :  { %727 = dma.done.wait [#allocation3], 128  }
  0x35   :  { %728 = vsyncadd [#allocation3], 4294967168 }
  0x36   :  { %729 = dma.done.wait [#allocation6], 10240  }
  0x37   :  { %730 = vsyncadd [#allocation6], 4294957056  ;;  %v740_v0 = vmov 0.0   ;;  %v62_v1 = vld [vmem:[#allocation5 + $0x8] sm:$0xff]  ;;  %v64_v3 = vld [vmem:[#allocation5 + $0x18] sm:$0xff]  ;;  %vm164_vm0 = vcmask 261120  }
  0x38   :  { %232 = vmatprep.mubr.f32.mxu0 %v740_v0  ;;  %303 = vmatprep.mubr.f32.mxu1 %v740_v0  ;;  %v66_v2 = vld [vmem:[#allocation5 + $0x28] sm:$0xff]  ;;  %v68_v5 = vld [vmem:[#allocation5 + $0x38] sm:$0xff]  ;;  %v61_v6 = vld [vmem:[#allocation5] sm:$0xff]  ;;  %s741_s8 = smov [#allocation8]  }
  0x39   :  { %v550_v4 = vpack.c.bf16 %v66_v2, %v62_v1  ;;  %v65_v7 = vld [vmem:[#allocation5 + $0x20] sm:$0xff]  ;;  %v558_v8 = vpack.c.bf16 %v68_v5, %v64_v3  ;;  %v63_v10 = vld [vmem:[#allocation5 + $0x10] sm:$0xff]  ;;  %v70_v12 = vld [vmem:[#allocation5 + $0x48] sm:$0xff]  ;;  %s467_s9 = sshll.u32 %s741_s8, 4  ;;  %s468_s9 = int_to_ptr.vmem [resolvable:$true] %s467_s9 }
  0x3a   :  { %v552_v9 = vpack.c.bf16 %v65_v7, %v61_v6  ;;  %v67_v11 = vld [vmem:[#allocation5 + $0x30] sm:$0xff]  ;;  %v74_v14 = vld [vmem:[#allocation5 + $0x68] sm:$0xff]  ;;  %v72_v15 = vld [vmem:[#allocation5 + $0x58] sm:$0xff]  ;;  %s705_s10 = scalar_lea.vmem %s468_s9, 128  ;;  %p710_p11 = scmp.lt.s32.totalorder %s468_s9, %s468_s9 }
  0x3b   :  { %551 = vmatprep.subr.bf16.mxu0 %v550_v4  ;;  %v560_v13 = vpack.c.bf16 %v67_v11, %v63_v10  ;;  %v76_v16 = vld [vmem:[#allocation5 + $0x78] sm:$0xff]  ;;  %559 = vmatprep.subr.bf16.mxu1 %v558_v8  ;;  %v554_v17 = vpack.c.bf16 %v74_v14, %v70_v12  ;;  %v69_v19 = vld [vmem:[#allocation5 + $0x40] sm:$0xff]  ;;  %v71_v21 = vld [vmem:[#allocation5 + $0x50] sm:$0xff]  ;;  %p706_p10 = scmp.ne.s32.totalorder %s468_s9, %s705_s10  ;;  %p711_p12 = scmp.lt.s32.totalorder %s705_s10, %s705_s10 }
  0x3c   :  { %553 = vmatpush1.bf16.msra.mxu0 %v552_v9  ;;  %v562_v18 = vpack.c.bf16 %v76_v16, %v72_v15  ;;  %v73_v20 = vld [vmem:[#allocation5 + $0x60] sm:$0xff]  ;;  %v75_v23 = vld [vmem:[#allocation5 + $0x70] sm:$0xff]  ;;  %v60_v26 = vld [vmem:[#allocation2] sm:$0xff] }
  0x3d   :  { %561 = vmatpush1.bf16.msra.mxu1 %v560_v13  ;;  %v556_v22 = vpack.c.bf16 %v73_v20, %v69_v19  ;;  %v94_v24 = vld [vmem:[#allocation7 + $0x80] sm:$0xff]  ;;  %555 = vmatprep.subr.bf16.mxu0 %v554_v17  ;;  %v564_v25 = vpack.c.bf16 %v75_v23, %v71_v21  ;;  %v95_v27 = vld [vmem:[#allocation7 + $0x88] sm:$0xff]  ;;  %v96_v37 = vld [vmem:[#allocation7 + $0x90] sm:$0xff]  ;;  %p712_p13 = por %p711_p12, %p710_p11 }
  0x3e   :  { %563 = vmatprep.subr.bf16.mxu1 %v562_v18  ;;  %v126_v28 = vld [vmem:[#allocation7 + $0x180] sm:$0xff]  ;;  %v127_v29 = vld [vmem:[#allocation7 + $0x188] sm:$0xff]  ;;  %v566_v30 = vpack.c.bf16 %v95_v27, %v94_v24  ;;  %v97_v38 = vld [vmem:[#allocation7 + $0x98] sm:$0xff] }
  0x3f   :  { %v598_v31 = vpack.c.bf16 %v127_v29, %v126_v28  ;;  %v78_v32 = vld [vmem:[#allocation7] sm:$0xff]  ;;  %v79_v33 = vld [vmem:[#allocation7 + $0x8] sm:$0xff]  ;;  %v570_v40 = vpack.c.bf16 %v97_v38, %v96_v37  ;;  %v128_v41 = vld [vmem:[#allocation7 + $0x190] sm:$0xff]  ;;  %p713_p0 = pnand %p712_p13, %p706_p10 }
  0x40   :  { %v110_v34 = vld [vmem:[#allocation7 + $0x100] sm:$0xff]  ;;  %557 = vmatpush1.bf16.msra.mxu0 %v556_v22  ;;  %v568_v35 = vpack.c.bf16 %v79_v33, %v78_v32  ;;  %v111_v36 = vld [vmem:[#allocation7 + $0x108] sm:$0xff]  ;;  %v129_v42 = vld [vmem:[#allocation7 + $0x198] sm:$0xff] }
  0x41   :  { %565 = vmatpush1.bf16.msra.mxu1 %v564_v25  ;;  %567 = vmatprep.subr.bf16.mxu0 %v566_v30  ;;  %v600_v39 = vpack.c.bf16 %v111_v36, %v110_v34  ;;  %v80_v43 = vld [vmem:[#allocation7 + $0x10] sm:$0xff]  ;;  %v602_v44 = vpack.c.bf16 %v129_v42, %v128_v41  ;;  %v81_v45 = vld [vmem:[#allocation7 + $0x18] sm:$0xff]  ;;  %v98_v48 = vld [vmem:[#allocation7 + $0xa0] sm:$0xff] }
  0x42   :  { %599 = vmatprep.subr.bf16.mxu1 %v598_v31  ;;  %v112_v46 = vld [vmem:[#allocation7 + $0x110] sm:$0xff]  ;;  %v113_v47 = vld [vmem:[#allocation7 + $0x118] sm:$0xff]  ;;  %v99_v49 = vld [vmem:[#allocation7 + $0xa8] sm:$0xff]  ;;  %v572_v51 = vpack.c.bf16 %v81_v45, %v80_v43 }
  0x43   :  { %477 = vmatmul.mubr.msk.f32.vlgmr.msra.gmra.mrb[0].mxu0 %vm164_vm0, %v60_v26  ;;  %v130_v50 = vld [vmem:[#allocation7 + $0x1a0] sm:$0xff]  ;;  %v131_v52 = vld [vmem:[#allocation7 + $0x1a8] sm:$0xff]  ;;  %v604_v53 = vpack.c.bf16 %v113_v47, %v112_v46  ;;  %v574_v54 = vpack.c.bf16 %v99_v49, %v98_v48  ;;  %v100_v60 = vld [vmem:[#allocation7 + $0xb0] sm:$0xff] }
  0x44   :  { %478 = vmatmul.mubr.msk.f32.vlgmr.msra.gmra.mrb[0].mxu1 %vm164_vm0, %v60_v26  ;;  %569 = vmatpush3.bf16.msra.mxu0 %v568_v35  ;;  %v82_v55 = vld [vmem:[#allocation7 + $0x20] sm:$0xff]  ;;  %v83_v56 = vld [vmem:[#allocation7 + $0x28] sm:$0xff]  ;;  %v606_v58 = vpack.c.bf16 %v131_v52, %v130_v50  ;;  %v101_v61 = vld [vmem:[#allocation7 + $0xb8] sm:$0xff] }
  0x45   :  { %601 = vmatpush3.bf16.msra.mxu1 %v600_v39  ;;  %571 = vmatprep.subr.bf16.mxu0 %v570_v40  ;;  %v114_v57 = vld [vmem:[#allocation7 + $0x120] sm:$0xff]  ;;  %v115_v59 = vld [vmem:[#allocation7 + $0x128] sm:$0xff]  ;;  %v132_v62 = vld [vmem:[#allocation7 + $0x1b0] sm:$0xff]  ;;  %v576_v0 = vpack.c.bf16 %v83_v56, %v82_v55  ;;  %v578_v2 = vpack.c.bf16 %v101_v61, %v100_v60 }
  0x46   :  { %603 = vmatprep.subr.bf16.mxu1 %v602_v44  ;;  %v133_v63 = vld [vmem:[#allocation7 + $0x1b8] sm:$0xff]  ;;  %v608_v1 = vpack.c.bf16 %v115_v59, %v114_v57  ;;  %v84_v3 = vld [vmem:[#allocation7 + $0x30] sm:$0xff]  ;;  %v102_v8 = vld [vmem:[#allocation7 + $0xc0] sm:$0xff] }
  0x47   :  { %v85_v4 = vld [vmem:[#allocation7 + $0x38] sm:$0xff]  ;;  %v116_v5 = vld [vmem:[#allocation7 + $0x130] sm:$0xff]  ;;  %v610_v6 = vpack.c.bf16 %v133_v63, %v132_v62  ;;  %v103_v9 = vld [vmem:[#allocation7 + $0xc8] sm:$0xff] }
  0x48   :  { %573 = vmatpush3.bf16.msra.mxu0 %v572_v51  ;;  %v117_v7 = vld [vmem:[#allocation7 + $0x138] sm:$0xff]  ;;  %v134_v10 = vld [vmem:[#allocation7 + $0x1c0] sm:$0xff]  ;;  %v135_v11 = vld [vmem:[#allocation7 + $0x1c8] sm:$0xff]  ;;  %v580_v12 = vpack.c.bf16 %v85_v4, %v84_v3  ;;  %v582_v14 = vpack.c.bf16 %v103_v9, %v102_v8 }
  0x49   :  { %605 = vmatpush3.bf16.msra.mxu1 %v604_v53  ;;  %575 = vmatprep.subr.bf16.mxu0 %v574_v54  ;;  %v612_v13 = vpack.c.bf16 %v117_v7, %v116_v5  ;;  %v86_v15 = vld [vmem:[#allocation7 + $0x40] sm:$0xff]  ;;  %v87_v16 = vld [vmem:[#allocation7 + $0x48] sm:$0xff]  ;;  %v614_v18 = vpack.c.bf16 %v135_v11, %v134_v10  ;;  %v104_v20 = vld [vmem:[#allocation7 + $0xd0] sm:$0xff] }
  0x4a   :  { %607 = vmatprep.subr.bf16.mxu1 %v606_v58  ;;  %v118_v17 = vld [vmem:[#allocation7 + $0x140] sm:$0xff]  ;;  %v119_v19 = vld [vmem:[#allocation7 + $0x148] sm:$0xff]  ;;  %v105_v21 = vld [vmem:[#allocation7 + $0xd8] sm:$0xff]  ;;  %v584_v24 = vpack.c.bf16 %v87_v16, %v86_v15  ;;  %v144_v58 = vlaneseq }
  0x4b   :  { %v136_v22 = vld [vmem:[#allocation7 + $0x1d0] sm:$0xff]  ;;  %v137_v23 = vld [vmem:[#allocation7 + $0x1d8] sm:$0xff]  ;;  %v616_v25 = vpack.c.bf16 %v119_v19, %v118_v17  ;;  %v586_v26 = vpack.c.bf16 %v105_v21, %v104_v20  ;;  %v106_v32 = vld [vmem:[#allocation7 + $0xe0] sm:$0xff] }
  0x4c   :  { %577 = vmatpush3.bf16.msra.mxu0 %v576_v0  ;;  %v88_v27 = vld [vmem:[#allocation7 + $0x50] sm:$0xff]  ;;  %v89_v28 = vld [vmem:[#allocation7 + $0x58] sm:$0xff]  ;;  %v618_v30 = vpack.c.bf16 %v137_v23, %v136_v22  ;;  %v107_v33 = vld [vmem:[#allocation7 + $0xe8] sm:$0xff]  ;;  %v145_v59 = vshrl.u32 %v144_v58, 7 }
  0x4d   :  { %609 = vmatpush3.bf16.msra.mxu1 %v608_v1  ;;  %579 = vmatprep.subr.bf16.mxu0 %v578_v2  ;;  %v120_v29 = vld [vmem:[#allocation7 + $0x150] sm:$0xff]  ;;  %v121_v31 = vld [vmem:[#allocation7 + $0x158] sm:$0xff]  ;;  %v138_v34 = vld [vmem:[#allocation7 + $0x1e0] sm:$0xff]  ;;  %v588_v36 = vpack.c.bf16 %v89_v28, %v88_v27  ;;  %v590_v38 = vpack.c.bf16 %v107_v33, %v106_v32 }
  0x4e   :  { %611 = vmatprep.subr.bf16.mxu1 %v610_v6  ;;  %v139_v35 = vld [vmem:[#allocation7 + $0x1e8] sm:$0xff]  ;;  %v620_v37 = vpack.c.bf16 %v121_v31, %v120_v29  ;;  %v90_v40 = vld [vmem:[#allocation7 + $0x60] sm:$0xff]  ;;  %v108_v46 = vld [vmem:[#allocation7 + $0xf0] sm:$0xff]  ;;  %v146_v60 = vsub.s32 0, %v145_v59  ;;  %v154_v62 = vsub.s32 2, %v145_v59  ;;  %v150_v63 = vsub.s32 1, %v145_v59 }
  0x4f   :  { %v622_v39 = vpack.c.bf16 %v139_v35, %v138_v34  ;;  %v91_v41 = vld [vmem:[#allocation7 + $0x68] sm:$0xff]  ;;  %v122_v42 = vld [vmem:[#allocation7 + $0x160] sm:$0xff]  ;;  %v109_v47 = vld [vmem:[#allocation7 + $0xf8] sm:$0xff]  ;;  %v158_v0 = vsub.s32 3, %v145_v59 }
  0x50   :  { %581 = vmatpush3.bf16.msra.mxu0 %v580_v12  ;;  %v592_v43 = vpack.c.bf16 %v91_v41, %v90_v40  ;;  %v123_v44 = vld [vmem:[#allocation7 + $0x168] sm:$0xff]  ;;  %v140_v48 = vld [vmem:[#allocation7 + $0x1f0] sm:$0xff]  ;;  %v594_v49 = vpack.c.bf16 %v109_v47, %v108_v46  ;;  %v141_v50 = vld [vmem:[#allocation7 + $0x1f8] sm:$0xff] }
  0x51   :  { %613 = vmatpush3.bf16.msra.mxu1 %v612_v13  ;;  %583 = vmatprep.subr.bf16.mxu0 %v582_v14  ;;  %v624_v45 = vpack.c.bf16 %v123_v44, %v122_v42  ;;  %v92_v51 = vld [vmem:[#allocation7 + $0x70] sm:$0xff]  ;;  %v93_v52 = vld [vmem:[#allocation7 + $0x78] sm:$0xff]  ;;  %v626_v53 = vpack.c.bf16 %v141_v50, %v140_v48 }
  0x52   :  { %615 = vmatprep.subr.bf16.mxu1 %v614_v18  ;;  %v596_v54 = vpack.c.bf16 %v93_v52, %v92_v51  ;;  %v124_v55 = vld [vmem:[#allocation7 + $0x170] sm:$0xff]  ;;  %v125_v56 = vld [vmem:[#allocation7 + $0x178] sm:$0xff] }
  0x53   :  { %v628_v57 = vpack.c.bf16 %v125_v56, %v124_v55  ;;  %v77_v61 = vld [vmem:[%s830_s2] sm:$0xf] }
  0x54   :  { %585 = vmatpush3.bf16.msra.mxu0 %v584_v24  ;;  %v147_v1 = vrot.slane %v77_v61, %v146_v60  ;;  %v155_v2 = vrot.slane %v77_v61, %v154_v62  ;;  %v151_v3 = vrot.slane %v77_v61, %v150_v63  ;;  %v159_v4 = vrot.slane %v77_v61, %v158_v0  ;;  %v479_v19 = vld [vmem:[%s832_s4] ss:$0 sm:$0xff] }
  0x55   :  { %617 = vmatpush3.bf16.msra.mxu1 %v616_v25  ;;  %587 = vmatprep.subr.bf16.mxu0 %v586_v26 }
  0x56   :  { %619 = vmatprep.subr.bf16.mxu1 %v618_v30 }
  0x58   :  { %589 = vmatpush3.bf16.msra.mxu0 %v588_v36 }
  0x59   :  { %621 = vmatpush3.bf16.msra.mxu1 %v620_v37  ;;  %591 = vmatprep.subr.bf16.mxu0 %v590_v38 }
  0x5a   :  { %623 = vmatprep.subr.bf16.mxu1 %v622_v39 }
  0x5c   :  { %593 = vmatpush3.bf16.msra.mxu0 %v592_v43 }
  0x5d   :  { %625 = vmatpush3.bf16.msra.mxu1 %v624_v45  ;;  %595 = vmatprep.subr.bf16.mxu0 %v594_v49 }
  0x5e   :  { %627 = vmatprep.subr.bf16.mxu1 %v626_v53 }
  0x60   :  { %597 = vmatpush3.bf16.msra.mxu0 %v596_v54 }
  0x61   :  { %629 = vmatpush3.bf16.msra.mxu1 %v628_v57 }
 0x116   :  { %v234_v5 = vpop.f32.mrb[0].mxu0 }
 0x117   :  { %v235_v6 = vadd.f32 %v234_v5, %v147_v1  ;;  %v305_v7 = vpop.f32.mrb[0].mxu1  ;;  %v236_v8 = vpop.f32.mrb[1].mxu0 }
 0x118   :  { %v306_v9 = vadd.f32 %v305_v7, %v155_v2  ;;  %v237_v10 = vadd.f32 %v236_v8, %v151_v3  ;;  %v307_v11 = vpop.f32.mrb[1].mxu1 }
 0x119   :  { %v308_v12 = vadd.f32 %v307_v11, %v159_v4  ;;  %v310_v15 = vmax.f32 %v235_v6, 0.0 }
 0x11a   :  { %v312_v13 = vmax.f32 %v306_v9, 0.0  ;;  %v311_v14 = vmax.f32 %v237_v10, 0.0 }
 0x11b   :  { %v313_v16 = vmax.f32 %v308_v12, 0.0 }
 0x11c   :  { %384 = vmatprep.mubr.f32.mxu0 %v311_v14 }
 0x11d   :  { %454 = vmatprep.mubr.f32.mxu1 %v313_v16  ;;  %385 = vmatmul.mubr.f32.vlgmr.msra.gmra.mrb[2].mxu0 %v310_v15 }
 0x11e   :  { %455 = vmatmul.mubr.f32.vlgmr.msra.gmra.mrb[2].mxu1 %v312_v13 }
 0x1f0   :  { %v512_v17 = vpop.f32.mrb[2].mxu0 }
 0x1f1   :  { %v547_v18 = vpop.f32.mrb[2].mxu1  ;;  %v513_v20 = vpop.f32.mrb[3].mxu0 }
 0x1f2   :  { %v514_v21 = vadd.f32 %v513_v20, %v512_v17  ;;  %v548_v22 = vpop.f32.mrb[3].mxu1 }
 0x1f3   :  { %v549_v23 = vadd.f32 %v548_v22, %v547_v18 }
 0x1f4   :  { %v387_v24 = vadd.f32 %v514_v21, %v479_v19 }
 0x1f6   :  { %v457_v25 = vadd.f32 %v549_v23, %v387_v24 }
 0x1f8   :  { %460 = vst [vmem:[#allocation8] sm:$0xff] %v457_v25 }
 0x1f9   :  { %716 = shalt.err (!%p713_p0)
}
 0x1fa   :  { %s717_s4 = scalar_lea.hbm %s833_s5, 128 }
 0x1fb   :  { %p718_p1 = scmp.ne.s32.totalorder %s833_s5, %s717_s4  ;;  %p721_p2 = scmp.lt.u32.totalorder %s717_s4, %s833_s5 }
 0x1fd   :  { %p723_p3 = pnand %p721_p2, %p718_p1 }
 0x1ff   :  { %726 = shalt.err (!%p723_p3)
}
 0x200   :  { %470 = dma.vmem_to_hbm [thread:$0]  %s468_s9, 128, %s833_s5, [#allocation4]  }
 0x201   :  { %731 = dma.done.wait [#allocation4], 128  }
 0x202   :  { %732 = vsyncadd [#allocation4], 4294967168 }
 0x203   :  { %474 = vsyncpa [#allocation3], 1 }
 0x204   :  { %475 = vsyncpa [#allocation6], 1 }
 0x205   :  { %476 = vsyncpa [#allocation4], 1 }

</bundles_post_ra>
